<compile_context>
chip_gen: v5e
topology: v5e:2x2
jax: 0.10.0
libtpu: 0.0.40
codegen_flags: <defaults>
</compile_context>

<pallas_src>
import jax
import jax.numpy as jnp
from jax.experimental import pallas as pl
from jax.experimental.pallas import tpu as pltpu


# --------------------------------------------------------------------------- kernel
def _make_root_kernel(num_children, batch_block, residual):
    """Kernel over one (batch-block, spatial-tile) block.

    refs = [x_0..x_{k-1}, w_0..w_{k-1}, bias, out]
      x_i:  (bn, Ci, ts)   child tile (NCHW-native: channels x spatial columns)
      w_i:  (Cout, Ci)     BN-scale-folded weight chunk, in activation dtype
      bias: (Cout, 1)      folded BN bias (f32)
      out:  (bn, Cout, ts)
    """
    def kernel(*refs):
        x_refs = refs[:num_children]
        w_refs = refs[num_children:2 * num_children]
        bias_ref = refs[2 * num_children]
        o_ref = refs[2 * num_children + 1]

        ws = [wr[...] for wr in w_refs]       # hoisted: grid-/batch-invariant
        bias = bias_ref[...]                  # (Cout, 1), f32

        for b in range(batch_block):          # static unroll over images in block
            x0 = x_refs[0][b]                 # (C0, ts)
            acc = jnp.dot(ws[0], x0, preferred_element_type=jnp.float32)
            for w_i, xr in zip(ws[1:], x_refs[1:]):
                acc = acc + jnp.dot(w_i, xr[b], preferred_element_type=jnp.float32)
            y = acc + bias
            if residual:
                # children[0] is the first concat chunk -> reuse its tile (no extra DMA).
                y = y + x0.astype(jnp.float32)
            o_ref[b] = jnp.maximum(y, 0.0).astype(o_ref.dtype)

    return kernel


# ----------------------------------------------------------------------- VMEM planning
def _round_up(x, m):
    return -(-x // m) * m


def _sublane_pad(c, elem_bytes):
    # sublane multiple: f32 -> 8, bf16 -> 16, int8 -> 32
    return _round_up(c, 8 * max(1, 4 // elem_bytes))


def _vmem_capacity_bytes():
    try:
        cap = int(getattr(pltpu.get_tpu_info(), "vmem_capacity_bytes", 0))
        if cap > 0:
            return cap
    except Exception:
        pass
    return 64 * 1024 * 1024  # conservative fallback (v7x per-TC capacity)


def _plan(n, hw, cins, cout, elem_bytes, w_elem_bytes, child_buffering,
          spatial_tile=None, batch_block=None):
    """Pick (batch_block, spatial_tile, grid, vmem_limit) from a generation-aware budget."""
    cap = _vmem_capacity_bytes()
    budget = int(0.4 * cap)

    cin_pad = sum(_sublane_pad(c, elem_bytes) for c in cins)
    cout_pad = _sublane_pad(cout, elem_bytes)

    # Grid-invariant operands. Weights counted x2 (conservative: covers the fallback
    # where single-buffering via pl.Buffered(1) is unavailable). Bias is f32.
    fixed = sum(2 * _sublane_pad(cout, w_elem_bytes) * _round_up(c, 128) * w_elem_bytes
                for c in cins)
    fixed += _sublane_pad(cout, 4) * 128 * 4

    # bytes per 1 lane column per image (children multi-buffered, output double-buffered)
    per_col = (cin_pad * child_buffering + cout_pad * 2) * elem_bytes
    avail = max(budget - fixed, per_col * 128)

    hw_lanes = _round_up(hw, 128)

    if spatial_tile is not None or batch_block is not None:
        bn = batch_block or 1
        ts = spatial_tile or hw
    elif hw <= 1024:
        # Small feature map: take the full spatial extent per step and block over N
        # (one contiguous linear DMA per child per step), but keep >= 2 grid steps
        # when n > 1 so both v7x TensorCores get work.
        ts = hw
        per_image = per_col * hw_lanes
        bn_max = max(1, avail // per_image)
        bn_cap = min(bn_max, n if n == 1 else max(1, n // 2))
        bn = max(d for d in range(1, n + 1) if n % d == 0 and d <= bn_cap)
    else:
        # Large feature map: per-image spatial tiling, balanced/even step count.
        bn = 1
        units = hw_lanes // 128
        ts_units = max(1, min(avail // (per_col * 128), units))
        t = -(-units // ts_units)
        if (n * t) % 2 == 1 and t < units:   # balance for 2-TC grid sharding (v7x)
            t += 1
        ts_units = -(-units // t)
        ts = ts_units * 128

    gb = pl.cdiv(n, bn)
    gs = pl.cdiv(hw, ts)

    # Actual footprint of the chosen plan -> vmem_limit_bytes (with margin).
    footprint = fixed + bn * per_col * _round_up(ts, 128)
    limit = int(footprint * 1.25) + (2 << 20)
    limit = max(16 << 20, min(limit, int(cap * 0.9)))
    return bn, ts, (gb, gs), limit


# ------------------------------------------------------------------------- wrapper
def root_forward(children_nchw, conv_w, bn_gamma, bn_beta, bn_mean, bn_var,
                 *, residual, eps=1e-5, spatial_tile=None, batch_block=None,
                 child_buffering=2):
    """children_nchw: list of (N, Ci, H, W). conv_w: (Cout, sum(Ci), 1, 1)."""
    n, c0, h, w = children_nchw[0].shape
    hw = h * w
    cout = conv_w.shape[0]
    cins = [c.shape[1] for c in children_nchw]
    cin_total = sum(cins)
    if conv_w.shape[1] != cin_total:
        raise ValueError(f"conv_w Cin={conv_w.shape[1]} != sum(children Ci)={cin_total}")
    if residual and c0 != cout:
        raise ValueError(f"residual requires children[0] channels ({c0}) == Cout ({cout})")

    out_dtype = children_nchw[0].dtype
    elem_bytes = jnp.dtype(out_dtype).itemsize
    # Weights in the activation dtype -> native bf16 MXU path when children are bf16;
    # accumulation stays f32 inside the kernel (preferred_element_type).
    w_dtype = out_dtype
    w_elem_bytes = jnp.dtype(w_dtype).itemsize

    # ---- fold eval-mode BN into the conv -------------------------------------
    scale = bn_gamma.astype(jnp.float32) / jnp.sqrt(bn_var.astype(jnp.float32) + eps)
    w_mat = conv_w.reshape(cout, cin_total).astype(jnp.float32) * scale[:, None]
    bias = (bn_beta.astype(jnp.float32)
            - bn_mean.astype(jnp.float32) * scale).reshape(cout, 1)

    # per-child weight chunks (fused concat), cast to activation dtype
    w_chunks, off = [], 0
    for ci in cins:
        w_chunks.append(w_mat[:, off:off + ci].astype(w_dtype))
        off += ci

    # NCHW -> (N, C, H*W): layout-preserving reshape, no transpose, no concat.
    xs = [c.reshape(n, c.shape[1], hw) for c in children_nchw]

    bn_blk, ts, grid, vmem_limit = _plan(n, hw, cins, cout, elem_bytes,
                                         w_elem_bytes, child_buffering,
                                         spatial_tile, batch_block)

    def x_map(b, j):
        return (b, 0, j)

    def w_map(b, j):
        return (0, 0)

    kernel = _make_root_kernel(len(children_nchw), bn_blk, residual)

    def build(single_buffer_weights):
        w_kwargs = dict(pipeline_mode=pl.Buffered(1)) if single_buffer_weights else {}
        x_kwargs = (dict(pipeline_mode=pl.Buffered(child_buffering))
                    if child_buffering != 2 else {})
        in_specs = [pl.BlockSpec((bn_blk, ci, ts), x_map, **x_kwargs) for ci in cins]
        in_specs += [pl.BlockSpec((cout, ci), w_map, **w_kwargs) for ci in cins]
        in_specs += [pl.BlockSpec((cout, 1), w_map, **w_kwargs)]
        out_spec = pl.BlockSpec((bn_blk, cout, ts), x_map)
        return pl.pallas_call(
            kernel,
            out_shape=jax.ShapeDtypeStruct((n, cout, hw), out_dtype),
            grid_spec=pltpu.PrefetchScalarGridSpec(
                num_scalar_prefetch=0,
                grid=grid,
                in_specs=in_specs,
                out_specs=out_spec,
            ),
            compiler_params=pltpu.CompilerParams(
                dimension_semantics=("parallel", "parallel"),
                vmem_limit_bytes=vmem_limit,
            ),
        )

    try:
        out_flat = build(True)(*xs, *w_chunks, bias)
    except Exception:
        # pipeline_mode / pl.Buffered(1) unsupported on this jax build: plain specs.
        out_flat = build(False)(*xs, *w_chunks, bias)

    return out_flat.reshape(n, cout, h, w)


# ----------------------------------------------------------------------- reference
def _reference(children_nchw, conv_w, bn_gamma, bn_beta, bn_mean, bn_var,
               *, residual, eps=1e-5):
    children_nchw = [c.astype(jnp.float32) for c in children_nchw]
    x = jnp.concatenate(children_nchw, axis=1)                       # (N, Cin, H, W)
    cout, cin = conv_w.shape[0], conv_w.shape[1]
    y = jnp.einsum("nchw,oc->nohw", x, conv_w.reshape(cout, cin))    # 1x1 conv
    scale = (bn_gamma / jnp.sqrt(bn_var + eps)).reshape(1, cout, 1, 1)
    b = (bn_beta - bn_mean * bn_gamma / jnp.sqrt(bn_var + eps)).reshape(1, cout, 1, 1)
    y = y * scale + b
    if residual:
        y = y + children_nchw[0]
    return jnp.maximum(y, 0.0)


def _make_params(key, cout, cin_total):
    k3, k4, k5, k6, k7 = jax.random.split(key, 5)
    conv_w = 0.1 * jax.random.normal(k3, (cout, cin_total, 1, 1), dtype=jnp.float32)
    bn_gamma = 1.0 + 0.1 * jax.random.normal(k4, (cout,), dtype=jnp.float32)
    bn_beta = 0.1 * jax.random.normal(k5, (cout,), dtype=jnp.float32)
    bn_mean = 0.05 * jax.random.normal(k6, (cout,), dtype=jnp.float32)
    bn_var = jnp.abs(1.0 + 0.1 * jax.random.normal(k7, (cout,), dtype=jnp.float32))
    return conv_w, bn_gamma, bn_beta, bn_mean, bn_var


if __name__ == "__main__":
    key = jax.random.PRNGKey(0)
    k_a, k_b, k_c, k_d, k_p1, k_p2, k_p3 = jax.random.split(key, 7)

    # ---- Test 1: Root(in=8, out=4, kernel_size=1), N=2, 16x16, f32 -----------
    N, H, W = 2, 16, 16
    C1, C2, Cout = 4, 4, 4
    x1 = jax.random.normal(k_a, (N, C1, H, W), dtype=jnp.float32)
    x2 = jax.random.normal(k_b, (N, C2, H, W), dtype=jnp.float32)
    params = _make_params(k_p1, Cout, C1 + C2)

    out_r = jax.block_until_ready(
        root_forward([x1, x2], *params, residual=True))
    ref_r = _reference([x1, x2], *params, residual=True)
    assert out_r.shape == (N, Cout, H, W)
    assert jnp.allclose(out_r, ref_r, atol=1e-4, rtol=1e-4), "residual path mismatch"

    out_nr = jax.block_until_ready(
        root_forward([x1, x2], *params, residual=False))
    ref_nr = _reference([x1, x2], *params, residual=False)
    assert jnp.allclose(out_nr, ref_nr, atol=1e-4, rtol=1e-4), "non-residual path mismatch"

    # ---- Test 2: small feature map (7x7), batched-over-N block path ----------
    N2, H2, W2 = 4, 7, 7
    C1b, C2b, Coutb = 8, 8, 8
    y1 = jax.random.normal(k_c, (N2, C1b, H2, W2), dtype=jnp.float32)
    y2 = jax.random.normal(k_d, (N2, C2b, H2, W2), dtype=jnp.float32)
    params2 = _make_params(k_p2, Coutb, C1b + C2b)
    out_s = jax.block_until_ready(
        root_forward([y1, y2], *params2, residual=True))
    ref_s = _reference([y1, y2], *params2, residual=True)
    assert jnp.allclose(out_s, ref_s, atol=1e-4, rtol=1e-4), "small-map batched path mismatch"

    # ---- Test 3: larger feature map (40x40) -> per-image spatial tiling path --
    N3, H3, W3 = 2, 40, 40
    z1 = jax.random.normal(k_a, (N3, C1b, H3, W3), dtype=jnp.float32)
    z2 = jax.random.normal(k_b, (N3, C2b, H3, W3), dtype=jnp.float32)
    params3 = _make_params(k_p3, Coutb, C1b + C2b)
    out_l = jax.block_until_ready(
        root_forward([z1, z2], *params3, residual=True))
    ref_l = _reference([z1, z2], *params3, residual=True)
    assert jnp.allclose(out_l, ref_l, atol=1e-4, rtol=1e-4), "spatial-tiled path mismatch"

    # ---- Test 4: bf16 I/O (weights folded + cast to bf16, f32 accumulation) ---
    x1b = x1.astype(jnp.bfloat16)
    x2b = x2.astype(jnp.bfloat16)
    out_bf = jax.block_until_ready(
        root_forward([x1b, x2b], *params, residual=True))
    assert out_bf.dtype == jnp.bfloat16
    ref_bf = _reference([x1b, x2b], *params, residual=True)
    assert jnp.allclose(out_bf.astype(jnp.float32), ref_bf, atol=1e-1, rtol=1e-1), \
        "bf16 path mismatch"

    print("KERNEL_OK")
</pallas_src>

<mosaic_0001>
module attributes {stable_mosaic.version = 11 : i64} {
  func.func @kernel(%arg0: i32, %arg1: i32, %arg2: memref<1x4x256xf32, #tpu.memory_space<vmem>>, %arg3: memref<1x4x256xf32, #tpu.memory_space<vmem>>, %arg4: memref<4x4xf32, #tpu.memory_space<vmem>>, %arg5: memref<4x4xf32, #tpu.memory_space<vmem>>, %arg6: memref<4x1xf32, #tpu.memory_space<vmem>>, %arg7: memref<1x4x256xf32, #tpu.memory_space<vmem>>) attributes {dimension_semantics = [#tpu.dimension_semantics<parallel>, #tpu.dimension_semantics<parallel>], iteration_bounds = array<i64: 2, 1>, scalar_prefetch = 0 : i64, scratch_operands = 0 : i64, tpu.core_type = #tpu.core_type<tc>, window_params = [{transform_indices = @transform_0, window_bounds = array<i64: 1, 4, 256>}, {transform_indices = @transform_1, window_bounds = array<i64: 1, 4, 256>}, {pipeline_mode = #tpu.pipeline_mode<synchronous>, transform_indices = @transform_2, window_bounds = array<i64: 4, 4>}, {pipeline_mode = #tpu.pipeline_mode<synchronous>, transform_indices = @transform_3, window_bounds = array<i64: 4, 4>}, {pipeline_mode = #tpu.pipeline_mode<synchronous>, transform_indices = @transform_4, window_bounds = array<i64: 4, 1>}, {transform_indices = @transform_5, window_bounds = array<i64: 1, 4, 256>}]} {
    %c0 = arith.constant 0 : index
    %c0_0 = arith.constant 0 : index
    %0 = vector.load %arg4[%c0, %c0_0] : memref<4x4xf32, #tpu.memory_space<vmem>>, vector<4x4xf32>
    %c0_1 = arith.constant 0 : index
    %c0_2 = arith.constant 0 : index
    %1 = vector.load %arg5[%c0_1, %c0_2] : memref<4x4xf32, #tpu.memory_space<vmem>>, vector<4x4xf32>
    %c0_3 = arith.constant 0 : index
    %c0_4 = arith.constant 0 : index
    %2 = vector.load %arg6[%c0_3, %c0_4] : memref<4x1xf32, #tpu.memory_space<vmem>>, vector<4x1xf32>
    %c0_5 = arith.constant 0 : index
    %c0_6 = arith.constant 0 : index
    %c0_7 = arith.constant 0 : index
    %3 = vector.load %arg2[%c0_5, %c0_6, %c0_7] : memref<1x4x256xf32, #tpu.memory_space<vmem>>, vector<1x4x256xf32>
    %4 = vector.shape_cast %3 : vector<1x4x256xf32> to vector<4x256xf32>
    %cst = arith.constant dense<0.000000e+00> : vector<4x256xf32>
    %5 = tpu.matmul %0, %4, %cst {dimension_numbers = #tpu.dot_dimension_numbers<[1], [0], [0], [1], [0, 0, 1, 1], [], []>} : vector<4x4xf32>, vector<4x256xf32>, vector<4x256xf32> -> vector<4x256xf32>
    %c0_8 = arith.constant 0 : index
    %c0_9 = arith.constant 0 : index
    %c0_10 = arith.constant 0 : index
    %6 = vector.load %arg3[%c0_8, %c0_9, %c0_10] : memref<1x4x256xf32, #tpu.memory_space<vmem>>, vector<1x4x256xf32>
    %7 = vector.shape_cast %6 : vector<1x4x256xf32> to vector<4x256xf32>
    %cst_11 = arith.constant dense<0.000000e+00> : vector<4x256xf32>
    %8 = tpu.matmul %1, %7, %cst_11 {dimension_numbers = #tpu.dot_dimension_numbers<[1], [0], [0], [1], [0, 0, 1, 1], [], []>} : vector<4x4xf32>, vector<4x256xf32>, vector<4x256xf32> -> vector<4x256xf32>
    %9 = arith.addf %5, %8 : vector<4x256xf32>
    %10 = vector.broadcast %2 : vector<4x1xf32> to vector<4x256xf32>
    %11 = arith.addf %9, %10 : vector<4x256xf32>
    %12 = arith.addf %11, %4 : vector<4x256xf32>
    %cst_12 = arith.constant 0.000000e+00 : f32
    %13 = vector.broadcast %cst_12 : f32 to vector<4x256xf32>
    %14 = arith.maximumf %12, %13 : vector<4x256xf32>
    %c0_13 = arith.constant 0 : index
    %c0_14 = arith.constant 0 : index
    %c0_15 = arith.constant 0 : index
    %15 = vector.load %arg7[%c0_13, %c0_14, %c0_15] : memref<1x4x256xf32, #tpu.memory_space<vmem>>, vector<1x4x256xf32>
    %16 = vector.shape_cast %15 : vector<1x4x256xf32> to vector<4x256xf32>
    %17 = vector.shape_cast %14 : vector<4x256xf32> to vector<1x4x256xf32>
    tpu.vector_store %arg7[%c0_13, %c0_14, %c0_15], %17 {strides = array<i32>} : memref<1x4x256xf32, #tpu.memory_space<vmem>>, vector<1x4x256xf32>,
    return
  }
  func.func @transform_0(%arg0: i32, %arg1: i32) -> (i32, i32, i32) {
    %c0_i32 = arith.constant 0 : i32
    %c0_i32_0 = arith.constant 0 : i32
    return %arg0, %c0_i32, %arg1 : i32, i32, i32
  }
  func.func @transform_1(%arg0: i32, %arg1: i32) -> (i32, i32, i32) {
    %c0_i32 = arith.constant 0 : i32
    %c0_i32_0 = arith.constant 0 : i32
    return %arg0, %c0_i32, %arg1 : i32, i32, i32
  }
  func.func @transform_2(%arg0: i32, %arg1: i32) -> (i32, i32) {
    %c0_i32 = arith.constant 0 : i32
    %c0_i32_0 = arith.constant 0 : i32
    %c0_i32_1 = arith.constant 0 : i32
    return %c0_i32, %c0_i32_0 : i32, i32
  }
  func.func @transform_3(%arg0: i32, %arg1: i32) -> (i32, i32) {
    %c0_i32 = arith.constant 0 : i32
    %c0_i32_0 = arith.constant 0 : i32
    %c0_i32_1 = arith.constant 0 : i32
    return %c0_i32, %c0_i32_0 : i32, i32
  }
  func.func @transform_4(%arg0: i32, %arg1: i32) -> (i32, i32) {
    %c0_i32 = arith.constant 0 : i32
    %c0_i32_0 = arith.constant 0 : i32
    %c0_i32_1 = arith.constant 0 : i32
    return %c0_i32, %c0_i32_0 : i32, i32
  }
  func.func @transform_5(%arg0: i32, %arg1: i32) -> (i32, i32, i32) {
    %c0_i32 = arith.constant 0 : i32
    %c0_i32_0 = arith.constant 0 : i32
    return %arg0, %c0_i32, %arg1 : i32, i32, i32
  }
}

module attributes {stable_mosaic.version = 11 : i64} {
  func.func @kernel(%arg0: i32, %arg1: i32, %arg2: memref<1x4x256xf32, #tpu.memory_space<vmem>>, %arg3: memref<1x4x256xf32, #tpu.memory_space<vmem>>, %arg4: memref<4x4xf32, #tpu.memory_space<vmem>>, %arg5: memref<4x4xf32, #tpu.memory_space<vmem>>, %arg6: memref<4x1xf32, #tpu.memory_space<vmem>>, %arg7: memref<1x4x256xf32, #tpu.memory_space<vmem>>) attributes {dimension_semantics = [#tpu.dimension_semantics<parallel>, #tpu.dimension_semantics<parallel>], iteration_bounds = array<i64: 2, 1>, scalar_prefetch = 0 : i64, scratch_operands = 0 : i64, tpu.core_type = #tpu.core_type<tc>, window_params = [{transform_indices = @transform_0, window_bounds = array<i64: 1, 4, 256>}, {transform_indices = @transform_1, window_bounds = array<i64: 1, 4, 256>}, {pipeline_mode = #tpu.pipeline_mode<synchronous>, transform_indices = @transform_2, window_bounds = array<i64: 4, 4>}, {pipeline_mode = #tpu.pipeline_mode<synchronous>, transform_indices = @transform_3, window_bounds = array<i64: 4, 4>}, {pipeline_mode = #tpu.pipeline_mode<synchronous>, transform_indices = @transform_4, window_bounds = array<i64: 4, 1>}, {transform_indices = @transform_5, window_bounds = array<i64: 1, 4, 256>}]} {
    %c0 = arith.constant 0 : index
    %c0_0 = arith.constant 0 : index
    %0 = vector.load %arg4[%c0, %c0_0] : memref<4x4xf32, #tpu.memory_space<vmem>>, vector<4x4xf32>
    %c0_1 = arith.constant 0 : index
    %c0_2 = arith.constant 0 : index
    %1 = vector.load %arg5[%c0_1, %c0_2] : memref<4x4xf32, #tpu.memory_space<vmem>>, vector<4x4xf32>
    %c0_3 = arith.constant 0 : index
    %c0_4 = arith.constant 0 : index
    %2 = vector.load %arg6[%c0_3, %c0_4] : memref<4x1xf32, #tpu.memory_space<vmem>>, vector<4x1xf32>
    %c0_5 = arith.constant 0 : index
    %c0_6 = arith.constant 0 : index
    %c0_7 = arith.constant 0 : index
    %3 = vector.load %arg2[%c0_5, %c0_6, %c0_7] : memref<1x4x256xf32, #tpu.memory_space<vmem>>, vector<1x4x256xf32>
    %4 = vector.shape_cast %3 : vector<1x4x256xf32> to vector<4x256xf32>
    %cst = arith.constant dense<0.000000e+00> : vector<4x256xf32>
    %5 = tpu.matmul %0, %4, %cst {dimension_numbers = #tpu.dot_dimension_numbers<[1], [0], [0], [1], [0, 0, 1, 1], [], []>} : vector<4x4xf32>, vector<4x256xf32>, vector<4x256xf32> -> vector<4x256xf32>
    %c0_8 = arith.constant 0 : index
    %c0_9 = arith.constant 0 : index
    %c0_10 = arith.constant 0 : index
    %6 = vector.load %arg3[%c0_8, %c0_9, %c0_10] : memref<1x4x256xf32, #tpu.memory_space<vmem>>, vector<1x4x256xf32>
    %7 = vector.shape_cast %6 : vector<1x4x256xf32> to vector<4x256xf32>
    %cst_11 = arith.constant dense<0.000000e+00> : vector<4x256xf32>
    %8 = tpu.matmul %1, %7, %cst_11 {dimension_numbers = #tpu.dot_dimension_numbers<[1], [0], [0], [1], [0, 0, 1, 1], [], []>} : vector<4x4xf32>, vector<4x256xf32>, vector<4x256xf32> -> vector<4x256xf32>
    %9 = arith.addf %5, %8 : vector<4x256xf32>
    %10 = vector.broadcast %2 : vector<4x1xf32> to vector<4x256xf32>
    %11 = arith.addf %9, %10 : vector<4x256xf32>
    %12 = arith.addf %11, %4 : vector<4x256xf32>
    %cst_12 = arith.constant 0.000000e+00 : f32
    %13 = vector.broadcast %cst_12 : f32 to vector<4x256xf32>
    %14 = arith.maximumf %12, %13 : vector<4x256xf32>
    %c0_13 = arith.constant 0 : index
    %c0_14 = arith.constant 0 : index
    %c0_15 = arith.constant 0 : index
    %15 = vector.load %arg7[%c0_13, %c0_14, %c0_15] : memref<1x4x256xf32, #tpu.memory_space<vmem>>, vector<1x4x256xf32>
    %16 = vector.shape_cast %15 : vector<1x4x256xf32> to vector<4x256xf32>
    %17 = vector.shape_cast %14 : vector<4x256xf32> to vector<1x4x256xf32>
    tpu.vector_store %arg7[%c0_13, %c0_14, %c0_15], %17 {strides = array<i32>} : memref<1x4x256xf32, #tpu.memory_space<vmem>>, vector<1x4x256xf32>,
    return
  }
  func.func @transform_0(%arg0: i32, %arg1: i32) -> (i32, i32, i32) {
    %c0_i32 = arith.constant 0 : i32
    %c0_i32_0 = arith.constant 0 : i32
    return %arg0, %c0_i32, %arg1 : i32, i32, i32
  }
  func.func @transform_1(%arg0: i32, %arg1: i32) -> (i32, i32, i32) {
    %c0_i32 = arith.constant 0 : i32
    %c0_i32_0 = arith.constant 0 : i32
    return %arg0, %c0_i32, %arg1 : i32, i32, i32
  }
  func.func @transform_2(%arg0: i32, %arg1: i32) -> (i32, i32) {
    %c0_i32 = arith.constant 0 : i32
    %c0_i32_0 = arith.constant 0 : i32
    %c0_i32_1 = arith.constant 0 : i32
    return %c0_i32, %c0_i32_0 : i32, i32
  }
  func.func @transform_3(%arg0: i32, %arg1: i32) -> (i32, i32) {
    %c0_i32 = arith.constant 0 : i32
    %c0_i32_0 = arith.constant 0 : i32
    %c0_i32_1 = arith.constant 0 : i32
    return %c0_i32, %c0_i32_0 : i32, i32
  }
  func.func @transform_4(%arg0: i32, %arg1: i32) -> (i32, i32) {
    %c0_i32 = arith.constant 0 : i32
    %c0_i32_0 = arith.constant 0 : i32
    %c0_i32_1 = arith.constant 0 : i32
    return %c0_i32, %c0_i32_0 : i32, i32
  }
  func.func @transform_5(%arg0: i32, %arg1: i32) -> (i32, i32, i32) {
    %c0_i32 = arith.constant 0 : i32
    %c0_i32_0 = arith.constant 0 : i32
    return %arg0, %c0_i32, %arg1 : i32, i32, i32
  }
}

</mosaic_0001>

<bundles_post_ra>
// kernel: tpu_custom_call.1
= control target key start
LH: loop header
LB: loop body
LE: loop exit
PB: predicated region body
PF: predicated region fallthrough
CT: control target
= control target key end

     0   :  { %s1087_s0 = inlined_call_operand.hbm [shape: f32[2,4,256], index: 0, kind: input, shape index: {}]   ;;  %s1088_s1 = inlined_call_operand.hbm [shape: f32[2,4,256], index: 1, kind: input, shape index: {}]   ;;  %s1089_s2 = inlined_call_operand.vmem [shape: f32[4,4], index: 2, kind: input, shape index: {}]   ;;  %s1090_s3 = inlined_call_operand.hbm [shape: f32[4,4], index: 3, kind: input, shape index: {}]   ;;  %s1091_s4 = inlined_call_operand.vmem [shape: f32[4,1], index: 4, kind: input, shape index: {}]   ;;  %s1092_s5 = inlined_call_operand.hbm [shape: f32[2,4,256], index: 5, kind: output, shape index: {}]  }
   0x1   :  { %1097 = sst [smem:[#allocation18_spill]] %s1090_s3 }
   0x2   :  { %10 = vsyncpa [#allocation3], 0 }
   0x3   :  { %12 = vsyncpa [#allocation3 + $0x1], 0 }
   0x4   :  { %13 = vsyncpa [#allocation6], 0 }
   0x5   :  { %15 = vsyncpa [#allocation6 + $0x1], 0 }
   0x6   :  { %16 = vsyncpa [#allocation4], 0 }
   0x7   :  { %18 = vsyncpa [#allocation4 + $0x1], 0  ;;  %s917_s18 = smov 0   ;;  %s919_s19 = smov 0  }
   0x8   :  { %s921_s20 = smov 0   ;;  %s923_s21 = smov 0  }
   0x9   :  { %s925_s22 = smov 0   ;;  %s927_s23 = smov 0  }
   0xa LB: > { %1098 = sst [smem:[#allocation13_spill]] %s863_s18  ;;  %s948_s24 = sadd.s32 4294967295, %s883_s23   ;;  %s883_s23 = sphi %s927_s23, %s24_s23   ;;  %s879_s22 = sphi %s925_s22, %s1113_s22   ;;  %s875_s21 = sphi %s923_s21, %s1112_s21   ;;  %s871_s20 = sphi %s921_s20, %s1116_s20   ;;  %s867_s19 = sphi %s919_s19, %s1115_s19   ;;  %s863_s18 = sphi %s917_s18, %s1114_s18  }
   0xb   : > { %1099 = sst [smem:[#allocation14_spill]] %s879_s22  ;;  %s592_s25 = sadd.s32 4294967294, %s883_s23  }
   0xc   : > { %p58_p0 = scmp.ne.s32.totalorder %s867_s19, %s863_s18  ;;  %p59_p1 = scmp.eq.s32.totalorder %s948_s24, 0 }
   0xd   : > { %p175_p2 = scmp.eq.s32.totalorder %s948_s24, 1  ;;  %p181_p3 = scmp.eq.s32.totalorder %s592_s25, 1 }
   0xe   : > { %p957_p4 = por %p59_p1, %p58_p0  ;;  %p593_p5 = scmp.ge.s32.totalorder %s883_s23, 1 }
   0xf   : > { %p962_p6 = por %p181_p3, %p58_p0  ;;  %p188_p7 = scmp.lt.s32.totalorder %s883_s23, 3 }
  0x10   : > { %s1103_s3 = sld [smem:[#allocation18_spill]]  ;;  %p595_p9 = scmp.ge.s32.totalorder %s883_s23, 2 }
  0x11   : > { %s1101_s27 = scalar_select %p962_p6, 1, 0 }
  0x12   : > { %p970_p8 = pnand %p593_p5, %p188_p7  ;;  %s885_s7 = smov [#allocation7]  }
  0x13   : > { %1102 = sst [smem:[#allocation15_spill]] %s1101_s27  ;;  %s205_s8 = sshll.u32 %s885_s7, 4  ;;  %s206_s8 = int_to_ptr.vmem [resolvable:$true] %s205_s8 }
  0x14   : > { %p633_p10 = pneg %p970_p8  ;;  %s36_s9 = sadd.s32 1, %s879_s22 }
  0x15   : > { %p38_p12 = scmp.ge.s32.totalorder %s36_s9, 2  ;;  %s45_s10 = sadd.s32 1, %s871_s20 }
  0x16   : > { %s203_s30 = sshll.u32 %s1103_s3, 4  ;;  %p634_p11 = pnand %p633_p10, %p59_p1  ;;  %s204_s30 = int_to_ptr.hbm [resolvable:$true] %s203_s30 }
  0x17   : > { %p52_p13 = scmp.ne.s32.totalorder %s871_s20, %s867_s19  ;;  %p53_p0 = scmp.eq.s32.totalorder %s883_s23, 0 }
  0x18   : > { %636 = dma.hbm_to_vmem [thread:$0]  (!%p634_p11), %s204_s30, 64, %s206_s8, [#allocation6]  }
  0x19   : > { %s1118_s9 = smov (%p38_p12, %s36_s9), 0  ;;  %p986_p3 = por %p53_p0, %p52_p13 }
  0x1a   : > { %1105 = sst [smem:[#allocation16_spill]] %s1118_s9  ;;  %p992_p5 = por %p175_p2, %p52_p13 }
  0x1b   : > { %s40_s13 = ssub.s32 %s879_s22, %s1118_s9  ;;  %p649_p7 = scmp.lt.s32.totalorder %s883_s23, 2 }
  0x1c   : > { %p43_p10 = scmp.eq.s32.totalorder %s40_s13, 0  ;;  %s219_s14 = sand.u32 1, %s871_s20  }
  0x1d   : > { %s596_s15 = sshll.u32 %s219_s14, 3  ;;  %s620_s17 = sshll.u32 %s879_s22, 3 }
  0x1e   : > { %s1001_s16 = scalar_select %p43_p10, %s871_s20, %s45_s10  }
  0x1f   : > { %s230_s29 = scalar_lea.hbm %s1087_s0, %s620_s17  ;;  %s223_s30 = scalar_lea.vmem [#allocation2], %s596_s15 }
  0x20   : > { %1108 = sst [smem:[#allocation17_spill]] %s1001_s16  ;;  %s234_s7 = sshll.u32 %s223_s30, 4  ;;  %s235_s7 = int_to_ptr.vmem [resolvable:$true] %s234_s7 }
  0x21   : > { %s232_s8 = sshll.u32 %s230_s29, 4  ;;  %p638_p2 = pnand %p649_p7, %p986_p3  ;;  %s233_s8 = int_to_ptr.hbm [resolvable:$true] %s232_s8 }
  0x22   : > { %s252_s13 = scalar_lea.hbm %s1088_s1, %s620_s17  ;;  %s241_s27 = sand.u32 1, %s883_s23  }
  0x23   : > { %s220_s18 = scalar_lea.sflag [#allocation3], %s219_s14  ;;  %s254_s10 = sshll.u32 %s252_s13, 4  ;;  %s255_s10 = int_to_ptr.hbm [resolvable:$true] %s254_s10 }
  0x24   : > { %640 = dma.hbm_to_vmem [thread:$0]  (!%p638_p2), %s233_s8, 128, %s235_s7, %s220_s18  }
  0x25   : > { %s245_s22 = scalar_lea.vmem [#allocation5], %s596_s15  ;;  %s242_s25 = scalar_lea.sflag [#allocation6], %s241_s27 }
  0x26   : > { %s256_s16 = sshll.u32 %s245_s22, 4  ;;  %265 = sbr.rel (%p970_p8) target bundleno = 213 (0xd5), region = 40  ;;  %s257_s16 = int_to_ptr.vmem [resolvable:$true] %s256_s16 }
  0x27   : > { %643 = dma.hbm_to_vmem [thread:$0]  (!%p638_p2), %s255_s10, 128, %s257_s16, %s242_s25  }
  0x28   : > { %s1016_s11 = sand.u32 (!%p970_p8), 1, %s867_s19  }
  0x29   : > { %s1019_s3 = sshll.u32 (!%p970_p8), %s1016_s11, 3  ;;  %s268_s18 = scalar_lea.sflag (!%p970_p8), [#allocation3], %s1016_s11 }
  0x2a   : > { %s271_s9 = scalar_lea.vmem (!%p970_p8), [#allocation2], %s1019_s3 }
  0x2b   : > { %846 = dma.done.wait (%p957_p4), %s268_s18, 128  }
  0x2c   : > { %848 = vsyncadd (%p957_p4), %s268_s18, 4294967168  ;;  %s277_s22 = sand.u32 1, %s948_s24   ;;  %s281_s6 = scalar_lea.vmem [#allocation5], %s1019_s3 }
  0x2d   : > { %s278_s27 = scalar_lea.sflag [#allocation6], %s277_s22 }
  0x2e   : > { %850 = dma.done.wait (%p957_p4), %s278_s27, 128  }
  0x2f   : > { %852 = vsyncadd (%p957_p4), %s278_s27, 4294967168 }
  0x30   : > { %854 = dma.done.wait (%p59_p1), [#allocation6], 64  }
  0x31   : > { %856 = vsyncadd (%p59_p1), [#allocation6], 4294967232  ;;  %v886_v0 = vmov 0   ;;  %v326_v1 = vld [vmem:[%s281_s6] sm:$0xff]  ;;  %v325_v3 = vld [vmem:[%s271_s9] sm:$0xff]  ;;  %vm335_vm0 = vcmask 1043456  }
  0x32   : > { %702 = vset.pattern.permute.xlu0 %v886_v0  ;;  %328 = vst [vmem:[#allocation1] ss:$2 sm:$0xff] %v326_v1  ;;  %v324_v2 = vld [vmem:[%s1091_s4] sm:$0xf]  ;;  %v323_v4 = vld [vmem:[#allocation7] sm:$0xf] }
  0x33   : > { %433 = vperm.xlu0 %702, %v324_v2   ;;  %vm331_vm1 = vcmask 31744   ;;  %v322_v7 = vld [vmem:[%s1089_s2] sm:$0xf]  ;;  %s622_s16 = sshll.u32 %s875_s21, 3  ;;  %s318_s30 = scalar_lea.vmem [#allocation8], %s1019_s3 }
  0x34   : > { %s467_s29 = scalar_lea.hbm %s1092_s5, %s622_s16  ;;  %s469_s7 = sshll.u32 %s318_s30, 4  ;;  %s470_s7 = int_to_ptr.vmem [resolvable:$true] %s469_s7 }
  0x35   : > { %s471_s8 = sshll.u32 %s467_s29, 4  ;;  %s454_s21 = scalar_lea.sflag [#allocation4], %s1016_s11  ;;  %s472_s8 = int_to_ptr.hbm [resolvable:$true] %s471_s8 }
  0x36   : > { %s807_s13 = sshra.s32 %s472_s8, 4  ;;  %s813_s3 = scalar_lea.hbm %s1092_s5, 16  ;;  %s808_s13 = int_to_ptr.hbm [resolvable:$true] %s807_s13 }
  0x37   : > { %s809_s10 = scalar_lea.hbm %s808_s13, 8  ;;  %p814_p11 = scmp.lt.s32.totalorder %s808_s13, %s1092_s5 }
  0x38   : > { %p810_p1 = scmp.ne.s32.totalorder %s808_s13, %s809_s10  ;;  %p815_p12 = scmp.lt.s32.totalorder %s813_s3, %s809_s10 }
  0x39   : > { %v329_v5 = vld.sshfl [vmem:[#allocation1] sm:$0xff pattern:$0x75316420]  ;;  %v330_v6 = vld.sshfl [vmem:[#allocation1 + $0x8] sm:$0xff pattern:$0x75316420] }
  0x3a   : > { %381 = vst [vmem:[#allocation1] ss:$2 sm:$0xff] %v325_v3  ;;  %607 = vmatpush.msk.msra.mxu0 %vm335_vm0, %v329_v5  ;;  %609 = vmatpush.msk.msra.mxu1 %vm335_vm0, %v330_v6  ;;  %p811_p4 = pnand %p810_p1, %p992_p5  ;;  %p816_p13 = por %p815_p12, %p814_p11 }
  0x3b   : > { %608 = vmatmul.msk.f32.vlgmr.msra.gmra.mxu0 %vm331_vm1, %v323_v4  ;;  %610 = vmatmul.msk.f32.vlgmr.msra.gmra.mxu1 %vm331_vm1, %v323_v4 }
  0x3c   : > { %p812_p8 = pneg %p811_p4 }
  0x3e   : > { %p817_p0 = pnand %p816_p13, %p812_p8 }
  0x41   : > { %v382_v8 = vld.sshfl [vmem:[#allocation1] sm:$0xff pattern:$0x75316420]  ;;  %v383_v9 = vld.sshfl [vmem:[#allocation1 + $0x8] sm:$0xff pattern:$0x75316420] }
  0x42   : > { %611 = vmatpush.msk.msra.mxu2 %vm335_vm0, %v382_v8  ;;  %613 = vmatpush.msk.msra.mxu3 %vm335_vm0, %v383_v9  ;;  %438 = vst [vmem:[#allocation1] ss:$2 sm:$0xff] %v325_v3 }
  0x43   : > { %612 = vmatmul.msk.f32.vlgmr.msra.gmra.mxu2 %vm331_vm1, %v322_v7  ;;  %614 = vmatmul.msk.f32.vlgmr.msra.gmra.mxu3 %vm331_vm1, %v322_v7 }
  0x49   : > { %v439_v17 = vld.sshfl [vmem:[#allocation1] sm:$0xff pattern:$0x75316420]  ;;  %v440_v18 = vld.sshfl [vmem:[#allocation1 + $0x8] sm:$0xff pattern:$0x75316420] }
  0xa5   : > { %v434_v12 = vpop.permute.xlu0 %433 }
  0xb8   : > { %v357_v10 = vpop.f32.mrf.mxu0  ;;  %v377_v11 = vpop.f32.mrf.mxu1 }
  0xc6   : > { %v408_v13 = vpop.f32.mrf.mxu2  ;;  %v428_v14 = vpop.f32.mrf.mxu3 }
  0xc7   : > { %v409_v15 = vadd.f32 %v408_v13, %v357_v10  ;;  %v429_v16 = vadd.f32 %v428_v14, %v377_v11 }
  0xc9   : > { %v436_v19 = vadd.f32 %v434_v12, %v409_v15  ;;  %v437_v20 = vadd.f32 %v434_v12, %v429_v16 }
  0xcb   : > { %v443_v21 = vadd.f32 %v439_v17, %v436_v19  ;;  %v444_v22 = vadd.f32 %v440_v18, %v437_v20 }
  0xcd   : > { %v446_v23 = vmax.f32 %v444_v22, 0.0  ;;  %v445_v24 = vmax.f32 %v443_v21, 0.0 }
  0xcf   : > { %v449_v25 = vrot.slane %v446_v23, 4 }
  0xd1   : > { %v450_v26 = vsel %vm335_vm0, %v445_v24, %v449_v25 }
  0xd2   : > { %452 = vst [vmem:[%s318_s30] sm:$0xff] %v450_v26 }
  0xd3   : > { %820 = shalt.err (!%p817_p0)
}
  0xd4   : > { %631 = dma.vmem_to_hbm [thread:$0]  (%p992_p5), %s470_s7, 128, %s472_s8, %s454_s21  }
  0xd5 PF: > { %s1109_s11 = sld [smem:[#allocation13_spill]]  ;;  %p645_p3 = pnand %p595_p9, %p962_p6 }
  0xd7   : > { %p646_p7 = pneg %p645_p3 }
  0xdb   : > { %s483_s6 = sand.u32 1, %s1109_s11  }
  0xdc   : > { %s484_s14 = scalar_lea.sflag [#allocation4], %s483_s6 }
  0xdd   : > { %858 = dma.done.wait (%p646_p7), %s484_s14, 128  }
  0xde   : > { %860 = vsyncadd (%p646_p7), %s484_s14, 4294967168  ;;  %s24_s23 = sadd.s32 1, %s883_s23   ;;  %s1111_s15 = sld [smem:[#allocation17_spill]] }
  0xdf   : > { %p21_p10 = scmp.ge.s32.totalorder %s24_s23, 4   ;;  %s1112_s21 = sld [smem:[#allocation14_spill]] }
  0xe0   : > { %s1113_s22 = sld [smem:[#allocation16_spill]]  ;;  %s1114_s18 = smov %s867_s19 }
  0xe1   : > { %s1115_s19 = smov %s871_s20  ;;  %23 = sbr.rel (!%p21_p10) target bundleno = 10 (0xa), region = 102 }
  0xe4   : > { %s1116_s20 = smov %s1111_s15 }
  0xe6   :  { %490 = vsyncpa [#allocation3], 1 }
  0xe7   :  { %492 = vsyncpa [#allocation3 + $0x1], 1 }
  0xe8   :  { %493 = vsyncpa [#allocation6], 1 }
  0xe9   :  { %495 = vsyncpa [#allocation6 + $0x1], 1 }
  0xea   :  { %496 = vsyncpa [#allocation4], 1 }
  0xeb   :  { %498 = vsyncpa [#allocation4 + $0x1], 1 }

// kernel: tpu_custom_call.1
= control target key start
LH: loop header
LB: loop body
LE: loop exit
PB: predicated region body
PF: predicated region fallthrough
CT: control target
= control target key end

     0   :  { %s1087_s0 = inlined_call_operand.hbm [shape: f32[2,4,256], index: 0, kind: input, shape index: {}]   ;;  %s1088_s1 = inlined_call_operand.hbm [shape: f32[2,4,256], index: 1, kind: input, shape index: {}]   ;;  %s1089_s2 = inlined_call_operand.vmem [shape: f32[4,4], index: 2, kind: input, shape index: {}]   ;;  %s1090_s3 = inlined_call_operand.hbm [shape: f32[4,4], index: 3, kind: input, shape index: {}]   ;;  %s1091_s4 = inlined_call_operand.vmem [shape: f32[4,1], index: 4, kind: input, shape index: {}]   ;;  %s1092_s5 = inlined_call_operand.hbm [shape: f32[2,4,256], index: 5, kind: output, shape index: {}]  }
   0x1   :  { %1097 = sst [smem:[#allocation18_spill]] %s1090_s3 }
   0x2   :  { %10 = vsyncpa [#allocation3], 0 }
   0x3   :  { %12 = vsyncpa [#allocation3 + $0x1], 0 }
   0x4   :  { %13 = vsyncpa [#allocation6], 0 }
   0x5   :  { %15 = vsyncpa [#allocation6 + $0x1], 0 }
   0x6   :  { %16 = vsyncpa [#allocation4], 0 }
   0x7   :  { %18 = vsyncpa [#allocation4 + $0x1], 0  ;;  %s917_s18 = smov 0   ;;  %s919_s19 = smov 0  }
   0x8   :  { %s921_s20 = smov 0   ;;  %s923_s21 = smov 0  }
   0x9   :  { %s925_s22 = smov 0   ;;  %s927_s23 = smov 0  }
   0xa LB: > { %1098 = sst [smem:[#allocation13_spill]] %s863_s18  ;;  %s948_s24 = sadd.s32 4294967295, %s883_s23   ;;  %s883_s23 = sphi %s927_s23, %s24_s23   ;;  %s879_s22 = sphi %s925_s22, %s1113_s22   ;;  %s875_s21 = sphi %s923_s21, %s1112_s21   ;;  %s871_s20 = sphi %s921_s20, %s1116_s20   ;;  %s867_s19 = sphi %s919_s19, %s1115_s19   ;;  %s863_s18 = sphi %s917_s18, %s1114_s18  }
   0xb   : > { %1099 = sst [smem:[#allocation14_spill]] %s879_s22  ;;  %s592_s25 = sadd.s32 4294967294, %s883_s23  }
   0xc   : > { %p58_p0 = scmp.ne.s32.totalorder %s867_s19, %s863_s18  ;;  %p59_p1 = scmp.eq.s32.totalorder %s948_s24, 0 }
   0xd   : > { %p175_p2 = scmp.eq.s32.totalorder %s948_s24, 1  ;;  %p181_p3 = scmp.eq.s32.totalorder %s592_s25, 1 }
   0xe   : > { %p957_p4 = por %p59_p1, %p58_p0  ;;  %p593_p5 = scmp.ge.s32.totalorder %s883_s23, 1 }
   0xf   : > { %p962_p6 = por %p181_p3, %p58_p0  ;;  %p188_p7 = scmp.lt.s32.totalorder %s883_s23, 3 }
  0x10   : > { %s1103_s3 = sld [smem:[#allocation18_spill]]  ;;  %p595_p9 = scmp.ge.s32.totalorder %s883_s23, 2 }
  0x11   : > { %s1101_s27 = scalar_select %p962_p6, 1, 0 }
  0x12   : > { %p970_p8 = pnand %p593_p5, %p188_p7  ;;  %s885_s7 = smov [#allocation7]  }
  0x13   : > { %1102 = sst [smem:[#allocation15_spill]] %s1101_s27  ;;  %s205_s8 = sshll.u32 %s885_s7, 4  ;;  %s206_s8 = int_to_ptr.vmem [resolvable:$true] %s205_s8 }
  0x14   : > { %p633_p10 = pneg %p970_p8  ;;  %s36_s9 = sadd.s32 1, %s879_s22 }
  0x15   : > { %p38_p12 = scmp.ge.s32.totalorder %s36_s9, 2  ;;  %s45_s10 = sadd.s32 1, %s871_s20 }
  0x16   : > { %s203_s30 = sshll.u32 %s1103_s3, 4  ;;  %p634_p11 = pnand %p633_p10, %p59_p1  ;;  %s204_s30 = int_to_ptr.hbm [resolvable:$true] %s203_s30 }
  0x17   : > { %p52_p13 = scmp.ne.s32.totalorder %s871_s20, %s867_s19  ;;  %p53_p0 = scmp.eq.s32.totalorder %s883_s23, 0 }
  0x18   : > { %636 = dma.hbm_to_vmem [thread:$0]  (!%p634_p11), %s204_s30, 64, %s206_s8, [#allocation6]  }
  0x19   : > { %s1118_s9 = smov (%p38_p12, %s36_s9), 0  ;;  %p986_p3 = por %p53_p0, %p52_p13 }
  0x1a   : > { %1105 = sst [smem:[#allocation16_spill]] %s1118_s9  ;;  %p992_p5 = por %p175_p2, %p52_p13 }
  0x1b   : > { %s40_s13 = ssub.s32 %s879_s22, %s1118_s9  ;;  %p649_p7 = scmp.lt.s32.totalorder %s883_s23, 2 }
  0x1c   : > { %p43_p10 = scmp.eq.s32.totalorder %s40_s13, 0  ;;  %s219_s14 = sand.u32 1, %s871_s20  }
  0x1d   : > { %s596_s15 = sshll.u32 %s219_s14, 3  ;;  %s620_s17 = sshll.u32 %s879_s22, 3 }
  0x1e   : > { %s1001_s16 = scalar_select %p43_p10, %s871_s20, %s45_s10  }
  0x1f   : > { %s230_s29 = scalar_lea.hbm %s1087_s0, %s620_s17  ;;  %s223_s30 = scalar_lea.vmem [#allocation2], %s596_s15 }
  0x20   : > { %1108 = sst [smem:[#allocation17_spill]] %s1001_s16  ;;  %s234_s7 = sshll.u32 %s223_s30, 4  ;;  %s235_s7 = int_to_ptr.vmem [resolvable:$true] %s234_s7 }
  0x21   : > { %s232_s8 = sshll.u32 %s230_s29, 4  ;;  %p638_p2 = pnand %p649_p7, %p986_p3  ;;  %s233_s8 = int_to_ptr.hbm [resolvable:$true] %s232_s8 }
  0x22   : > { %s252_s13 = scalar_lea.hbm %s1088_s1, %s620_s17  ;;  %s241_s27 = sand.u32 1, %s883_s23  }
  0x23   : > { %s220_s18 = scalar_lea.sflag [#allocation3], %s219_s14  ;;  %s254_s10 = sshll.u32 %s252_s13, 4  ;;  %s255_s10 = int_to_ptr.hbm [resolvable:$true] %s254_s10 }
  0x24   : > { %640 = dma.hbm_to_vmem [thread:$0]  (!%p638_p2), %s233_s8, 128, %s235_s7, %s220_s18  }
  0x25   : > { %s245_s22 = scalar_lea.vmem [#allocation5], %s596_s15  ;;  %s242_s25 = scalar_lea.sflag [#allocation6], %s241_s27 }
  0x26   : > { %s256_s16 = sshll.u32 %s245_s22, 4  ;;  %265 = sbr.rel (%p970_p8) target bundleno = 213 (0xd5), region = 40  ;;  %s257_s16 = int_to_ptr.vmem [resolvable:$true] %s256_s16 }
  0x27   : > { %643 = dma.hbm_to_vmem [thread:$0]  (!%p638_p2), %s255_s10, 128, %s257_s16, %s242_s25  }
  0x28   : > { %s1016_s11 = sand.u32 (!%p970_p8), 1, %s867_s19  }
  0x29   : > { %s1019_s3 = sshll.u32 (!%p970_p8), %s1016_s11, 3  ;;  %s268_s18 = scalar_lea.sflag (!%p970_p8), [#allocation3], %s1016_s11 }
  0x2a   : > { %s271_s9 = scalar_lea.vmem (!%p970_p8), [#allocation2], %s1019_s3 }
  0x2b   : > { %846 = dma.done.wait (%p957_p4), %s268_s18, 128  }
  0x2c   : > { %848 = vsyncadd (%p957_p4), %s268_s18, 4294967168  ;;  %s277_s22 = sand.u32 1, %s948_s24   ;;  %s281_s6 = scalar_lea.vmem [#allocation5], %s1019_s3 }
  0x2d   : > { %s278_s27 = scalar_lea.sflag [#allocation6], %s277_s22 }
  0x2e   : > { %850 = dma.done.wait (%p957_p4), %s278_s27, 128  }
  0x2f   : > { %852 = vsyncadd (%p957_p4), %s278_s27, 4294967168 }
  0x30   : > { %854 = dma.done.wait (%p59_p1), [#allocation6], 64  }
  0x31   : > { %856 = vsyncadd (%p59_p1), [#allocation6], 4294967232  ;;  %v886_v0 = vmov 0   ;;  %v326_v1 = vld [vmem:[%s281_s6] sm:$0xff]  ;;  %v325_v3 = vld [vmem:[%s271_s9] sm:$0xff]  ;;  %vm335_vm0 = vcmask 1043456  }
  0x32   : > { %702 = vset.pattern.permute.xlu0 %v886_v0  ;;  %328 = vst [vmem:[#allocation1] ss:$2 sm:$0xff] %v326_v1  ;;  %v324_v2 = vld [vmem:[%s1091_s4] sm:$0xf]  ;;  %v323_v4 = vld [vmem:[#allocation7] sm:$0xf] }
  0x33   : > { %433 = vperm.xlu0 %702, %v324_v2   ;;  %vm331_vm1 = vcmask 31744   ;;  %v322_v7 = vld [vmem:[%s1089_s2] sm:$0xf]  ;;  %s622_s16 = sshll.u32 %s875_s21, 3  ;;  %s318_s30 = scalar_lea.vmem [#allocation8], %s1019_s3 }
  0x34   : > { %s467_s29 = scalar_lea.hbm %s1092_s5, %s622_s16  ;;  %s469_s7 = sshll.u32 %s318_s30, 4  ;;  %s470_s7 = int_to_ptr.vmem [resolvable:$true] %s469_s7 }
  0x35   : > { %s471_s8 = sshll.u32 %s467_s29, 4  ;;  %s454_s21 = scalar_lea.sflag [#allocation4], %s1016_s11  ;;  %s472_s8 = int_to_ptr.hbm [resolvable:$true] %s471_s8 }
  0x36   : > { %s807_s13 = sshra.s32 %s472_s8, 4  ;;  %s813_s3 = scalar_lea.hbm %s1092_s5, 16  ;;  %s808_s13 = int_to_ptr.hbm [resolvable:$true] %s807_s13 }
  0x37   : > { %s809_s10 = scalar_lea.hbm %s808_s13, 8  ;;  %p814_p11 = scmp.lt.s32.totalorder %s808_s13, %s1092_s5 }
  0x38   : > { %p810_p1 = scmp.ne.s32.totalorder %s808_s13, %s809_s10  ;;  %p815_p12 = scmp.lt.s32.totalorder %s813_s3, %s809_s10 }
  0x39   : > { %v329_v5 = vld.sshfl [vmem:[#allocation1] sm:$0xff pattern:$0x75316420]  ;;  %v330_v6 = vld.sshfl [vmem:[#allocation1 + $0x8] sm:$0xff pattern:$0x75316420] }
  0x3a   : > { %381 = vst [vmem:[#allocation1] ss:$2 sm:$0xff] %v325_v3  ;;  %607 = vmatpush.msk.msra.mxu0 %vm335_vm0, %v329_v5  ;;  %609 = vmatpush.msk.msra.mxu1 %vm335_vm0, %v330_v6  ;;  %p811_p4 = pnand %p810_p1, %p992_p5  ;;  %p816_p13 = por %p815_p12, %p814_p11 }
  0x3b   : > { %608 = vmatmul.msk.f32.vlgmr.msra.gmra.mxu0 %vm331_vm1, %v323_v4  ;;  %610 = vmatmul.msk.f32.vlgmr.msra.gmra.mxu1 %vm331_vm1, %v323_v4 }
  0x3c   : > { %p812_p8 = pneg %p811_p4 }
  0x3e   : > { %p817_p0 = pnand %p816_p13, %p812_p8 }
  0x41   : > { %v382_v8 = vld.sshfl [vmem:[#allocation1] sm:$0xff pattern:$0x75316420]  ;;  %v383_v9 = vld.sshfl [vmem:[#allocation1 + $0x8] sm:$0xff pattern:$0x75316420] }
  0x42   : > { %611 = vmatpush.msk.msra.mxu2 %vm335_vm0, %v382_v8  ;;  %613 = vmatpush.msk.msra.mxu3 %vm335_vm0, %v383_v9  ;;  %438 = vst [vmem:[#allocation1] ss:$2 sm:$0xff] %v325_v3 }
  0x43   : > { %612 = vmatmul.msk.f32.vlgmr.msra.gmra.mxu2 %vm331_vm1, %v322_v7  ;;  %614 = vmatmul.msk.f32.vlgmr.msra.gmra.mxu3 %vm331_vm1, %v322_v7 }
  0x49   : > { %v439_v17 = vld.sshfl [vmem:[#allocation1] sm:$0xff pattern:$0x75316420]  ;;  %v440_v18 = vld.sshfl [vmem:[#allocation1 + $0x8] sm:$0xff pattern:$0x75316420] }
  0xa5   : > { %v434_v12 = vpop.permute.xlu0 %433 }
  0xb8   : > { %v357_v10 = vpop.f32.mrf.mxu0  ;;  %v377_v11 = vpop.f32.mrf.mxu1 }
  0xc6   : > { %v408_v13 = vpop.f32.mrf.mxu2  ;;  %v428_v14 = vpop.f32.mrf.mxu3 }
  0xc7   : > { %v409_v15 = vadd.f32 %v408_v13, %v357_v10  ;;  %v429_v16 = vadd.f32 %v428_v14, %v377_v11 }
  0xc9   : > { %v436_v19 = vadd.f32 %v434_v12, %v409_v15  ;;  %v437_v20 = vadd.f32 %v434_v12, %v429_v16 }
  0xcb   : > { %v443_v21 = vadd.f32 %v439_v17, %v436_v19  ;;  %v444_v22 = vadd.f32 %v440_v18, %v437_v20 }
  0xcd   : > { %v446_v23 = vmax.f32 %v444_v22, 0.0  ;;  %v445_v24 = vmax.f32 %v443_v21, 0.0 }
  0xcf   : > { %v449_v25 = vrot.slane %v446_v23, 4 }
  0xd1   : > { %v450_v26 = vsel %vm335_vm0, %v445_v24, %v449_v25 }
  0xd2   : > { %452 = vst [vmem:[%s318_s30] sm:$0xff] %v450_v26 }
  0xd3   : > { %820 = shalt.err (!%p817_p0)
}
  0xd4   : > { %631 = dma.vmem_to_hbm [thread:$0]  (%p992_p5), %s470_s7, 128, %s472_s8, %s454_s21  }
  0xd5 PF: > { %s1109_s11 = sld [smem:[#allocation13_spill]]  ;;  %p645_p3 = pnand %p595_p9, %p962_p6 }
  0xd7   : > { %p646_p7 = pneg %p645_p3 }
  0xdb   : > { %s483_s6 = sand.u32 1, %s1109_s11  }
  0xdc   : > { %s484_s14 = scalar_lea.sflag [#allocation4], %s483_s6 }
  0xdd   : > { %858 = dma.done.wait (%p646_p7), %s484_s14, 128  }
  0xde   : > { %860 = vsyncadd (%p646_p7), %s484_s14, 4294967168  ;;  %s24_s23 = sadd.s32 1, %s883_s23   ;;  %s1111_s15 = sld [smem:[#allocation17_spill]] }
  0xdf   : > { %p21_p10 = scmp.ge.s32.totalorder %s24_s23, 4   ;;  %s1112_s21 = sld [smem:[#allocation14_spill]] }
  0xe0   : > { %s1113_s22 = sld [smem:[#allocation16_spill]]  ;;  %s1114_s18 = smov %s867_s19 }
  0xe1   : > { %s1115_s19 = smov %s871_s20  ;;  %23 = sbr.rel (!%p21_p10) target bundleno = 10 (0xa), region = 102 }
  0xe4   : > { %s1116_s20 = smov %s1111_s15 }
  0xe6   :  { %490 = vsyncpa [#allocation3], 1 }
  0xe7   :  { %492 = vsyncpa [#allocation3 + $0x1], 1 }
  0xe8   :  { %493 = vsyncpa [#allocation6], 1 }
  0xe9   :  { %495 = vsyncpa [#allocation6 + $0x1], 1 }
  0xea   :  { %496 = vsyncpa [#allocation4], 1 }
  0xeb   :  { %498 = vsyncpa [#allocation4 + $0x1], 1 }

</bundles_post_ra>
